<compile_context>
chip_gen: v7x
topology: tpu7x:2x2x1
jax: 0.10.0
libtpu: 0.0.40
codegen_flags: <defaults>
</compile_context>

<pallas_src>
import functools

import jax
import jax.numpy as jnp
from jax.experimental import pallas as pl
from jax.experimental.pallas import tpu as pltpu


def _vmem_capacity_bytes():
    """Best-effort query of per-core VMEM; conservative fallback (v7x = 64 MiB)."""
    try:
        info = pltpu.get_tpu_info()
        cap = int(getattr(info, "vmem_capacity_bytes", 0) or 0)
        if cap > 0:
            return cap
    except Exception:
        pass
    return 64 << 20


def _pool_excite_kernel(x_ref, w1_ref, w2_ref, s_ref, acc_ref, *,
                        hw, inv_hw, ragged):
    """Phase 1: streamed global average pool + fused excitation MLP.

    x_ref: (tile_b, c, hw_tile); w1_ref: (hid, c); w2_ref: (c, hid);
    s_ref: (tile_b, c, 1) output scales; acc_ref: (tile_b, c, hw_tile) f32.
    Steady state: masked f32 adds only.  Epilogue (last HW tile): one lane
    reduction + two tiny matvecs per image + sigmoid, write s.
    """
    k = pl.program_id(1)

    @pl.when(k == 0)
    def _init():
        acc_ref[...] = jnp.zeros_like(acc_ref)

    x = x_ref[...].astype(jnp.float32)
    if ragged:
        hw_tile = x.shape[-1]
        lane = jax.lax.broadcasted_iota(jnp.int32, x.shape, 2)
        x = jnp.where(lane < (hw - k * hw_tile), x, 0.0)  # drop OOB tail lanes
    acc_ref[...] += x

    @pl.when(k == pl.num_programs(1) - 1)
    def _finish():
        # Mean over the TRUE hw (masking above keeps the sum unbiased).
        means = jnp.sum(acc_ref[...], axis=-1, keepdims=True) * inv_hw  # (tb,c,1)
        w1 = w1_ref[...].astype(jnp.float32)   # (hid, c)
        w2 = w2_ref[...].astype(jnp.float32)   # (c, hid)
        for bi in range(s_ref.shape[0]):       # static unroll over the batch tile
            p = means[bi]                                                # (c, 1)
            hvec = jnp.maximum(
                jnp.dot(w1, p, preferred_element_type=jnp.float32), 0.0)  # (hid,1)
            s = jax.nn.sigmoid(
                jnp.dot(w2, hvec, preferred_element_type=jnp.float32))    # (c, 1)
            s_ref[bi] = s.astype(s_ref.dtype)


def _scale_kernel(s_ref, rst_ref, o_ref):
    """Phase 2: out = rst * s, streamed in lane-dense HW tiles (memory bound)."""
    # rst_ref / o_ref: (tile_b, c, hw_tile); s_ref: (tile_b, c, 1) same dtype.
    o_ref[...] = (rst_ref[...] * s_ref[...]).astype(o_ref.dtype)


def se_layer(x, rst, w1, w2, *, hw_tile=None, tile_b=None, donate_rst=False):
    """x, rst: (b, c, h, w) NCHW.  w1: (c//r, c), w2: (c, c//r)  (PyTorch Linear
    weight orientation, bias-free).  Returns rst * sigmoid(fc(avg_pool(x)))."""
    b, c, h, w = x.shape
    hw = h * w
    hid, c_in = w1.shape
    assert c_in == c and w2.shape == (c, hid), "weight shapes must match channel dims"
    itemsize = jnp.dtype(x.dtype).itemsize
    w_itemsize = jnp.dtype(w1.dtype).itemsize

    # ---- generation-aware tile selection -----------------------------------
    vmem_cap = _vmem_capacity_bytes()
    budget = min(vmem_cap // 3, 24 << 20)              # live blocks per kernel
    # bytes per HW lane per batch row across live buffers:
    #   pool : 2x streamed x block + 1x f32 accumulator
    #   scale: 2x rst block + 2x out block
    per_lane = c * max(2 * itemsize + 4, 4 * itemsize)

    if hw_tile is None:
        hw_tile = min(pl.cdiv(hw, 128) * 128,
                      2048 if vmem_cap >= (96 << 20) else 1024)
        while hw_tile > 128 and hw_tile * per_lane > budget:
            hw_tile -= 128
    else:
        hw_tile = max(128, pl.cdiv(hw_tile, 128) * 128)
    n_hw = pl.cdiv(hw, hw_tile)

    if tile_b is None:
        tile_b = 1
        while (2 * tile_b <= b and 2 * tile_b <= 8
               and b % (2 * tile_b) == 0                       # keep blocks full
               and (2 * tile_b) * hw_tile * per_lane <= budget
               and tile_b * c * hw_tile * itemsize < (1 << 20)):
            tile_b *= 2
    tile_b = max(1, min(tile_b, b))
    n_b = pl.cdiv(b, tile_b)

    needed = tile_b * hw_tile * per_lane + 2 * 2 * c * hid * w_itemsize
    vmem_limit = int(min(max(2 * needed, 32 << 20), max(vmem_cap * 3 // 4, 32 << 20)))

    xr = x.reshape(b, c, hw)       # free reshape (contiguous trailing dims)
    rr = rst.reshape(b, c, hw)

    # ---- Phase 1: pool + fused excite -> per-channel scales s (b, c, 1) ----
    s = pl.pallas_call(
        functools.partial(_pool_excite_kernel, hw=hw, inv_hw=1.0 / hw,
                          ragged=(hw % hw_tile != 0)),
        out_shape=jax.ShapeDtypeStruct((b, c, 1), rst.dtype),
        grid=(n_b, n_hw),
        in_specs=[
            pl.BlockSpec((tile_b, c, hw_tile), lambda i, k: (i, 0, k)),
            pl.BlockSpec((hid, c), lambda i, k: (0, 0)),
            pl.BlockSpec((c, hid), lambda i, k: (0, 0)),
        ],
        out_specs=pl.BlockSpec((tile_b, c, 1), lambda i, k: (i, 0, 0)),
        scratch_shapes=[pltpu.VMEM((tile_b, c, hw_tile), jnp.float32)],
        compiler_params=pltpu.CompilerParams(
            dimension_semantics=("parallel", "arbitrary"),
            vmem_limit_bytes=vmem_limit),
        cost_estimate=pl.CostEstimate(
            flops=b * c * hw + 4 * b * c * hid,
            transcendentals=b * c,
            bytes_accessed=b * c * hw * itemsize
                           + 2 * c * hid * w_itemsize + b * c * itemsize),
    )(xr, w1, w2)

    # ---- Phase 2: scale (memory bound, both grid axes parallel) ------------
    out = pl.pallas_call(
        _scale_kernel,
        out_shape=jax.ShapeDtypeStruct((b, c, hw), rst.dtype),
        grid=(n_b, n_hw),
        in_specs=[
            pl.BlockSpec((tile_b, c, 1), lambda i, j: (i, 0, 0)),
            pl.BlockSpec((tile_b, c, hw_tile), lambda i, j: (i, 0, j)),
        ],
        out_specs=pl.BlockSpec((tile_b, c, hw_tile), lambda i, j: (i, 0, j)),
        compiler_params=pltpu.CompilerParams(
            dimension_semantics=("parallel", "parallel"),
            vmem_limit_bytes=vmem_limit),
        input_output_aliases=({1: 0} if donate_rst else {}),
        cost_estimate=pl.CostEstimate(
            flops=b * c * hw, transcendentals=0,
            bytes_accessed=(2 * b * c * hw + b * c) * itemsize),
    )(s, rr)

    return out.reshape(b, c, h, w)


def se_layer_ref(x, rst, w1, w2):
    y = jnp.mean(x.astype(jnp.float32), axis=(2, 3))                    # (b, c)
    hmid = jnp.maximum(y @ w1.astype(jnp.float32).T, 0.0)               # (b, hid)
    s = jax.nn.sigmoid(hmid @ w2.astype(jnp.float32).T)                 # (b, c)
    return (rst.astype(jnp.float32) * s[:, :, None, None]).astype(rst.dtype)


if __name__ == "__main__":
    # Shapes consistent with SELayer(channel=32, reduction=16, expansion=1).
    b, c, h, w = 2, 32, 16, 16          # hw = 256 -> lane-dense, no ragged tile
    reduction = 16
    hid = c // reduction                # 2

    key = jax.random.PRNGKey(0)
    kx, kr, k1, k2 = jax.random.split(key, 4)

    x = jax.random.normal(kx, (b, c, h, w), dtype=jnp.float32)
    rst = jax.random.normal(kr, (b, c, h, w), dtype=jnp.float32)

    # PyTorch Linear weights (bias=False): W1 (hid, c), W2 (c, hid).
    bound1 = 1.0 / (c ** 0.5)
    bound2 = 1.0 / (hid ** 0.5)
    W1 = jax.random.uniform(k1, (hid, c), jnp.float32, -bound1, bound1)
    W2 = jax.random.uniform(k2, (c, hid), jnp.float32, -bound2, bound2)

    out = se_layer(x, rst, W1, W2)
    jax.block_until_ready(out)
    ref = se_layer_ref(x, rst, W1, W2)
    assert out.shape == (b, c, h, w)
    assert jnp.allclose(out, ref, atol=1e-5, rtol=1e-5), "mismatch vs reference"

    # Ragged spatial size (hw = 49, not a multiple of 128): no pad/slice copies,
    # tail lanes masked in-kernel.
    xp = jax.random.normal(kx, (b, c, 7, 7), dtype=jnp.float32)
    rp = jax.random.normal(kr, (b, c, 7, 7), dtype=jnp.float32)
    outp = se_layer(xp, rp, W1, W2)
    jax.block_until_ready(outp)
    assert jnp.allclose(outp, se_layer_ref(xp, rp, W1, W2),
                        atol=1e-5, rtol=1e-5), "mismatch (ragged hw)"

    # Multi-tile HW axis with a ragged last tile (hw = 400, hw_tile = 128).
    xm = jax.random.normal(kx, (b, c, 20, 20), dtype=jnp.float32)
    rm = jax.random.normal(kr, (b, c, 20, 20), dtype=jnp.float32)
    outm = se_layer(xm, rm, W1, W2, hw_tile=128)
    jax.block_until_ready(outm)
    assert jnp.allclose(outm, se_layer_ref(xm, rm, W1, W2),
                        atol=1e-5, rtol=1e-5), "mismatch (multi-tile hw)"

    # Odd batch (tile_b heuristic falls back to 1, n_b > 1) + ragged hw.
    x3 = jax.random.normal(kx, (3, c, 9, 9), dtype=jnp.float32)
    r3 = jax.random.normal(kr, (3, c, 9, 9), dtype=jnp.float32)
    out3 = se_layer(x3, r3, W1, W2)
    jax.block_until_ready(out3)
    assert jnp.allclose(out3, se_layer_ref(x3, r3, W1, W2),
                        atol=1e-5, rtol=1e-5), "mismatch (odd batch)"

    print("KERNEL_OK")
</pallas_src>

<mosaic_0001>
module attributes {stable_mosaic.version = 11 : i64} {
  func.func @_pool_excite_kernel(%arg0: i32, %arg1: i32, %arg2: memref<2x32x256xf32, #tpu.memory_space<vmem>>, %arg3: memref<2x32xf32, #tpu.memory_space<vmem>>, %arg4: memref<32x2xf32, #tpu.memory_space<vmem>>, %arg5: memref<2x32x1xf32, #tpu.memory_space<vmem>>, %arg6: memref<2x32x256xf32, #tpu.memory_space<vmem>>) attributes {dimension_semantics = [#tpu.dimension_semantics<parallel>, #tpu.dimension_semantics<arbitrary>], iteration_bounds = array<i64: 1, 1>, scalar_prefetch = 0 : i64, scratch_operands = 1 : i64, tpu.core_type = #tpu.core_type<tc>, window_params = [{transform_indices = @transform_0, window_bounds = array<i64: 2, 32, 256>}, {pipeline_mode = #tpu.pipeline_mode<synchronous>, transform_indices = @transform_1, window_bounds = array<i64: 2, 32>}, {pipeline_mode = #tpu.pipeline_mode<synchronous>, transform_indices = @transform_2, window_bounds = array<i64: 32, 2>}, {transform_indices = @transform_3, window_bounds = array<i64: 2, 32, 1>}]} {
    %c0_i32 = arith.constant 0 : i32
    %0 = arith.cmpi eq, %arg1, %c0_i32 : i32
    %1 = arith.extui %0 : i1 to i32
    %c0_i32_0 = arith.constant 0 : i32
    %2 = arith.cmpi ne, %1, %c0_i32_0 : i32
    scf.if %2 {
      %cst = arith.constant 0.000000e+00 : f32
      %10 = vector.broadcast %cst : f32 to vector<2x32x256xf32>
      %c0_11 = arith.constant 0 : index
      %c0_12 = arith.constant 0 : index
      %c0_13 = arith.constant 0 : index
      %11 = vector.load %arg6[%c0_11, %c0_12, %c0_13] : memref<2x32x256xf32, #tpu.memory_space<vmem>>, vector<2x32x256xf32>
      tpu.vector_store %arg6[%c0_11, %c0_12, %c0_13], %10 {strides = array<i32>} : memref<2x32x256xf32, #tpu.memory_space<vmem>>, vector<2x32x256xf32>,
    } else {
    }
    %c0 = arith.constant 0 : index
    %c0_1 = arith.constant 0 : index
    %c0_2 = arith.constant 0 : index
    %3 = vector.load %arg2[%c0, %c0_1, %c0_2] : memref<2x32x256xf32, #tpu.memory_space<vmem>>, vector<2x32x256xf32>
    %c0_3 = arith.constant 0 : index
    %c0_4 = arith.constant 0 : index
    %c0_5 = arith.constant 0 : index
    %4 = vector.load %arg6[%c0_3, %c0_4, %c0_5] : memref<2x32x256xf32, #tpu.memory_space<vmem>>, vector<2x32x256xf32>
    %5 = arith.addf %4, %3 : vector<2x32x256xf32>
    %c0_6 = arith.constant 0 : index
    %c0_7 = arith.constant 0 : index
    %c0_8 = arith.constant 0 : index
    %6 = vector.load %arg6[%c0_6, %c0_7, %c0_8] : memref<2x32x256xf32, #tpu.memory_space<vmem>>, vector<2x32x256xf32>
    tpu.vector_store %arg6[%c0_6, %c0_7, %c0_8], %5 {strides = array<i32>} : memref<2x32x256xf32, #tpu.memory_space<vmem>>, vector<2x32x256xf32>,
    %c0_i32_9 = arith.constant 0 : i32
    %7 = arith.cmpi eq, %arg1, %c0_i32_9 : i32
    %8 = arith.extui %7 : i1 to i32
    %c0_i32_10 = arith.constant 0 : i32
    %9 = arith.cmpi ne, %8, %c0_i32_10 : i32
    scf.if %9 {
      %c0_11 = arith.constant 0 : index
      %c0_12 = arith.constant 0 : index
      %c0_13 = arith.constant 0 : index
      %10 = vector.load %arg6[%c0_11, %c0_12, %c0_13] : memref<2x32x256xf32, #tpu.memory_space<vmem>>, vector<2x32x256xf32>
      %cst = arith.constant dense<0.000000e+00> : vector<2x32xf32>
      %11 = vector.multi_reduction <add>, %10, %cst [2] : vector<2x32x256xf32> to vector<2x32xf32>
      %12 = vector.shape_cast %11 : vector<2x32xf32> to vector<2x32x1xf32>
      %cst_14 = arith.constant 3.906250e-03 : f32
      %13 = vector.broadcast %cst_14 : f32 to vector<2x32x1xf32>
      %14 = arith.mulf %12, %13 : vector<2x32x1xf32>
      %c0_15 = arith.constant 0 : index
      %c0_16 = arith.constant 0 : index
      %15 = vector.load %arg3[%c0_15, %c0_16] : memref<2x32xf32, #tpu.memory_space<vmem>>, vector<2x32xf32>
      %c0_17 = arith.constant 0 : index
      %c0_18 = arith.constant 0 : index
      %16 = vector.load %arg4[%c0_17, %c0_18] : memref<32x2xf32, #tpu.memory_space<vmem>>, vector<32x2xf32>
      %17 = vector.extract_strided_slice %14 {offsets = [0, 0, 0], sizes = [1, 32, 1], strides = [1, 1, 1]} : vector<2x32x1xf32> to vector<1x32x1xf32>
      %18 = vector.shape_cast %17 : vector<1x32x1xf32> to vector<32x1xf32>
      %cst_19 = arith.constant dense<0.000000e+00> : vector<2x1xf32>
      %19 = tpu.matmul %15, %18, %cst_19 {dimension_numbers = #tpu.dot_dimension_numbers<[1], [0], [0], [1], [0, 0, 1, 1], [], []>} : vector<2x32xf32>, vector<32x1xf32>, vector<2x1xf32> -> vector<2x1xf32>
      %cst_20 = arith.constant 0.000000e+00 : f32
      %20 = vector.broadcast %cst_20 : f32 to vector<2x1xf32>
      %21 = arith.maximumf %19, %20 : vector<2x1xf32>
      %cst_21 = arith.constant dense<0.000000e+00> : vector<32x1xf32>
      %22 = tpu.matmul %16, %21, %cst_21 {dimension_numbers = #tpu.dot_dimension_numbers<[1], [0], [0], [1], [0, 0, 1, 1], [], []>} : vector<32x2xf32>, vector<2x1xf32>, vector<32x1xf32> -> vector<32x1xf32>
      %23 = arith.negf %22 : vector<32x1xf32>
      %24 = math.exp %23 : vector<32x1xf32>
      %cst_22 = arith.constant 1.000000e+00 : f32
      %25 = vector.broadcast %cst_22 : f32 to vector<32x1xf32>
      %26 = arith.addf %25, %24 : vector<32x1xf32>
      %27 = arith.divf %25, %26 : vector<32x1xf32>
      %c0_23 = arith.constant 0 : index
      %c0_24 = arith.constant 0 : index
      %c0_25 = arith.constant 0 : index
      %28 = vector.load %arg5[%c0_23, %c0_24, %c0_25] : memref<2x32x1xf32, #tpu.memory_space<vmem>>, vector<1x32x1xf32>
      %29 = vector.shape_cast %28 : vector<1x32x1xf32> to vector<32x1xf32>
      %30 = vector.shape_cast %27 : vector<32x1xf32> to vector<1x32x1xf32>
      tpu.vector_store %arg5[%c0_23, %c0_24, %c0_25], %30 {strides = array<i32>} : memref<2x32x1xf32, #tpu.memory_space<vmem>>, vector<1x32x1xf32>,
      %31 = vector.extract_strided_slice %14 {offsets = [1, 0, 0], sizes = [1, 32, 1], strides = [1, 1, 1]} : vector<2x32x1xf32> to vector<1x32x1xf32>
      %32 = vector.shape_cast %31 : vector<1x32x1xf32> to vector<32x1xf32>
      %cst_26 = arith.constant dense<0.000000e+00> : vector<2x1xf32>
      %33 = tpu.matmul %15, %32, %cst_26 {dimension_numbers = #tpu.dot_dimension_numbers<[1], [0], [0], [1], [0, 0, 1, 1], [], []>} : vector<2x32xf32>, vector<32x1xf32>, vector<2x1xf32> -> vector<2x1xf32>
      %cst_27 = arith.constant 0.000000e+00 : f32
      %34 = vector.broadcast %cst_27 : f32 to vector<2x1xf32>
      %35 = arith.maximumf %33, %34 : vector<2x1xf32>
      %cst_28 = arith.constant dense<0.000000e+00> : vector<32x1xf32>
      %36 = tpu.matmul %16, %35, %cst_28 {dimension_numbers = #tpu.dot_dimension_numbers<[1], [0], [0], [1], [0, 0, 1, 1], [], []>} : vector<32x2xf32>, vector<2x1xf32>, vector<32x1xf32> -> vector<32x1xf32>
      %37 = arith.negf %36 : vector<32x1xf32>
      %38 = math.exp %37 : vector<32x1xf32>
      %cst_29 = arith.constant 1.000000e+00 : f32
      %39 = vector.broadcast %cst_29 : f32 to vector<32x1xf32>
      %40 = arith.addf %39, %38 : vector<32x1xf32>
      %41 = arith.divf %39, %40 : vector<32x1xf32>
      %c1 = arith.constant 1 : index
      %c0_30 = arith.constant 0 : index
      %c0_31 = arith.constant 0 : index
      %42 = vector.load %arg5[%c1, %c0_30, %c0_31] : memref<2x32x1xf32, #tpu.memory_space<vmem>>, vector<1x32x1xf32>
      %43 = vector.shape_cast %42 : vector<1x32x1xf32> to vector<32x1xf32>
      %44 = vector.shape_cast %41 : vector<32x1xf32> to vector<1x32x1xf32>
      tpu.vector_store %arg5[%c1, %c0_30, %c0_31], %44 {strides = array<i32>} : memref<2x32x1xf32, #tpu.memory_space<vmem>>, vector<1x32x1xf32>,
    } else {
    }
    return
  }
  func.func @transform_0(%arg0: i32, %arg1: i32) -> (i32, i32, i32) {
    %c0_i32 = arith.constant 0 : i32
    %c0_i32_0 = arith.constant 0 : i32
    return %arg0, %c0_i32, %arg1 : i32, i32, i32
  }
  func.func @transform_1(%arg0: i32, %arg1: i32) -> (i32, i32) {
    %c0_i32 = arith.constant 0 : i32
    %c0_i32_0 = arith.constant 0 : i32
    %c0_i32_1 = arith.constant 0 : i32
    return %c0_i32, %c0_i32_0 : i32, i32
  }
  func.func @transform_2(%arg0: i32, %arg1: i32) -> (i32, i32) {
    %c0_i32 = arith.constant 0 : i32
    %c0_i32_0 = arith.constant 0 : i32
    %c0_i32_1 = arith.constant 0 : i32
    return %c0_i32, %c0_i32_0 : i32, i32
  }
  func.func @transform_3(%arg0: i32, %arg1: i32) -> (i32, i32, i32) {
    %c0_i32 = arith.constant 0 : i32
    %c0_i32_0 = arith.constant 0 : i32
    %c0_i32_1 = arith.constant 0 : i32
    return %arg0, %c0_i32, %c0_i32_0 : i32, i32, i32
  }
}

</mosaic_0001>

<bundles_post_ra>
// kernel: tpu_custom_call.1
= control target key start
LH: loop header
LB: loop body
LE: loop exit
PB: predicated region body
PF: predicated region fallthrough
CT: control target
= control target key end

     0   :  { %8 = vsyncpa [#allocation4], 0  ;;  %s725_s12 = smov [#allocation3]   ;;  %s834_s0 = inlined_call_operand.hbm [shape: f32[2,32,256], index: 0, kind: input, shape index: {}]   ;;  %s835_s1 = inlined_call_operand.vmem [shape: f32[2,32], index: 1, kind: input, shape index: {}]   ;;  %s836_s2 = inlined_call_operand.vmem [shape: f32[32,2], index: 2, kind: input, shape index: {}]   ;;  %s837_s3 = inlined_call_operand.vmem [shape: f32[2,32,1], index: 3, kind: output, shape index: {}]  }
   0x1   :  { %s14_s13 = sshll.u32 %s725_s12, 4  ;;  %s701_s16 = scalar_lea.hbm %s834_s0, 2048  ;;  %s15_s13 = int_to_ptr.vmem [resolvable:$true] %s14_s13 }
   0x2   :  { %p702_p0 = scmp.ne.s32.totalorder %s834_s0, %s701_s16  ;;  %p705_p1 = scmp.lt.u32.totalorder %s701_s16, %s834_s0 }
   0x4   :  { %p707_p2 = pnand %p705_p1, %p702_p0 }
   0x6   :  { %710 = shalt.err (!%p707_p2)
}
   0x7   :  { %s711_s21 = scalar_lea.vmem %s15_s13, 2048  ;;  %p716_p4 = scmp.lt.s32.totalorder %s15_s13, %s15_s13 }
   0x8   :  { %p712_p3 = scmp.ne.s32.totalorder %s15_s13, %s711_s21  ;;  %p717_p5 = scmp.lt.s32.totalorder %s711_s21, %s711_s21 }
   0xa   :  { %p718_p6 = por %p717_p5, %p716_p4 }
   0xc   :  { %p719_p7 = pnand %p718_p6, %p712_p3 }
   0xe   :  { %722 = shalt.err (!%p719_p7)
}
   0xf   :  { %s726_s22 = smov 256   ;;  %s727_s23 = smov 16  }
  0x10   :  { %20 = dma.hbm_to_vmem [thread:$0]  %s834_s0, 2048, %s15_s13, [#allocation4], %s726_s22, %s726_s22, %s727_s23  }
  0x11   :  { %723 = dma.done.wait [#allocation4], 2048  }
  0x12   :  { %724 = vsyncadd [#allocation4], 4294965248  ;;  %v52_v0 = vld [vmem:[#allocation3 + $0x20] sm:$0xff]  ;;  %v53_v1 = vld [vmem:[#allocation3 + $0x28] sm:$0xff]  ;;  %v728_v12 = vmov 0.0|0.0   ;;  %vm729_vm0 = vmmov 0  }
  0x13   :  { %v48_v2 = vld [vmem:[#allocation3] sm:$0xff]  ;;  %v137_v3 = vadd.f32 %v53_v1, %v52_v0  ;;  %v49_v4 = vld [vmem:[#allocation3 + $0x8] sm:$0xff]  ;;  %v54_v5 = vld [vmem:[#allocation3 + $0x30] sm:$0xff]  ;;  %649 = vmatprep.subr.bf16.mxu0 %v728_v12  ;;  %v730_v13 = vmov 0.0   ;;  %vm168_vm1 = vcmask 261120   ;;  %vm243_vm2 = vcmask 15360  }
  0x14   :  { %v55_v6 = vld [vmem:[#allocation3 + $0x38] sm:$0xff]  ;;  %v131_v7 = vadd.f32 %v49_v4, %v48_v2  ;;  %v50_v8 = vld [vmem:[#allocation3 + $0x10] sm:$0xff]  ;;  %619 = vmatprep.mubr.msk.f32.mxu0 %vm729_vm0, %v730_v13  ;;  %v56_v16 = vld [vmem:[#allocation3 + $0x40] sm:$0xff]  ;;  %vm256_vm3 = vcmask 1041408   ;;  %vm369_vm4 = vcmask 7168  }
  0x15   :  { %v51_v9 = vld [vmem:[#allocation3 + $0x18] sm:$0xff]  ;;  %138 = vadd.xlane.f32.xlu1 %v137_v3  ;;  %v140_v10 = vadd.f32 %v55_v6, %v54_v5  ;;  %v58_v14 = vld [vmem:[#allocation3 + $0x50] sm:$0xff]  ;;  %v57_v18 = vld [vmem:[#allocation3 + $0x48] sm:$0xff] }
  0x16   :  { %132 = vadd.xlane.f32.xlu0 %v131_v7  ;;  %v134_v11 = vadd.f32 %v51_v9, %v50_v8  ;;  %v59_v15 = vld [vmem:[#allocation3 + $0x58] sm:$0xff]  ;;  %v62_v19 = vld [vmem:[#allocation3 + $0x70] sm:$0xff]  ;;  %v143_v21 = vadd.f32 %v57_v18, %v56_v16  ;;  %v60_v22 = vld [vmem:[#allocation3 + $0x60] sm:$0xff] }
  0x17   :  { %v146_v17 = vadd.f32 %v59_v15, %v58_v14  ;;  %v63_v20 = vld [vmem:[#allocation3 + $0x78] sm:$0xff]  ;;  %v61_v23 = vld [vmem:[#allocation3 + $0x68] sm:$0xff]  ;;  %v163_v36 = vld [vmem:[%s835_s1] sm:$0x3] }
  0x18   :  { %v152_v24 = vadd.f32 %v63_v20, %v62_v19  ;;  %v149_v25 = vadd.f32 %v61_v23, %v60_v22  ;;  %v164_v37 = vld [vmem:[%s836_s2] sm:$0xff]  ;;  %v165_v49 = vld [vmem:[%s836_s2 + $0x8] sm:$0xff]  ;;  %v166_v51 = vld [vmem:[%s836_s2 + $0x10] sm:$0xff] }
  0x19   :  { %141 = vadd.xlane.f32.xlu1 %v140_v10  ;;  %624 = vmatprep.mubr.msk.f32.mxu1 %vm243_vm2, %v164_v37  ;;  %v167_v53 = vld [vmem:[%s836_s2 + $0x18] sm:$0xff] }
  0x1a   :  { %135 = vadd.xlane.f32.xlu0 %v134_v11 }
  0x1d   :  { %147 = vadd.xlane.f32.xlu1 %v146_v17 }
  0x1e   :  { %144 = vadd.xlane.f32.xlu0 %v143_v21 }
  0x21   :  { %153 = vadd.xlane.f32.xlu1 %v152_v24 }
  0x22   :  { %150 = vadd.xlane.f32.xlu0 %v149_v25 }
  0xa2   :  { %v139_v26 = vpop.xlane.xlu1 %138 }
  0xa3   :  { %v133_v27 = vpop.xlane.xlu0 %132  ;;  %v157_v32 = vmul.f32 0.00390625, %v139_v26 }
  0xa4   :  { %v155_v30 = vmul.f32 0.00390625, %v133_v27 }
  0xa6   :  { %v142_v28 = vpop.xlane.xlu1 %141 }
  0xa7   :  { %v136_v29 = vpop.xlane.xlu0 %135  ;;  %v158_v33 = vmul.f32 0.00390625, %v142_v28 }
  0xa8   :  { %v156_v31 = vmul.f32 0.00390625, %v136_v29 }
  0xa9   :  { %v653_v35 = vpack.c.bf16 %v158_v33, %v157_v32 }
  0xaa   :  { %v650_v34 = vpack.c.bf16 %v156_v31, %v155_v30  ;;  %v148_v38 = vpop.xlane.xlu1 %147 }
  0xab   :  { %v145_v39 = vpop.xlane.xlu0 %144  ;;  %v160_v40 = vmul.f32 0.00390625, %v148_v38 }
  0xac   :  { %651 = vmatpush3.bf16.msra.mxu0 %v650_v34  ;;  %v159_v41 = vmul.f32 0.00390625, %v145_v39 }
  0xad   :  { %652 = vmatprep.subr.bf16.mxu0 %v728_v12 }
  0xae   :  { %v154_v42 = vpop.xlane.xlu1 %153  ;;  %v656_v47 = vpack.c.bf16 %v160_v40, %v159_v41 }
  0xaf   :  { %v151_v43 = vpop.xlane.xlu0 %150  ;;  %v162_v48 = vmul.f32 0.00390625, %v154_v42 }
  0xb0   :  { %654 = vmatpush3.bf16.msra.mxu0 %v653_v35  ;;  %v161_v50 = vmul.f32 0.00390625, %v151_v43 }
  0xb2   :  { %v659_v52 = vpack.c.bf16 %v162_v48, %v161_v50 }
  0xb3   :  { %620 = vmatmul.mubr.msk.f32.vlgmr.msra.gmra.mrb[0].mxu0 %vm168_vm1, %v163_v36 }
  0xb4   :  { %643 = vmatprep.mubr.msk.f32.mxu0 %vm243_vm2, %v164_v37 }
 0x186   :  { %v238_v44 = vpop.f32.mrb[0].mxu0 }
 0x187   :  { %v242_v45 = vmax.f32 %v238_v44, 0.0  ;;  %v621_v46 = vpop.f32.mrb[1].mxu0 }
 0x189   :  { %622 = vmatprep.subr.msk.mxu1 %vm256_vm3, %v242_v45 }
 0x18a   :  { %623 = vmatpush3.msk.msra.mxu1 %vm256_vm3, %v242_v45 }
 0x18b   :  { %625 = vmatmul.mubr.msk.f32.vlgmr.msra.gmra.mrb[0].mxu1 %vm243_vm2, %v165_v49  ;;  %655 = vmatprep.subr.bf16.mxu1 %v728_v12 }
 0x18c   :  { %657 = vmatpush3.bf16.msra.mxu1 %v656_v47  ;;  %627 = vmatprep.mubr.msk.f32.mxu1 %vm243_vm2, %v166_v51 }
 0x18d   :  { %658 = vmatprep.subr.bf16.mxu1 %v728_v12 }
 0x18f   :  { %628 = vmatmul.mubr.msk.f32.gmra.mrb[2].mxu1 %vm243_vm2, %v167_v53 }
 0x190   :  { %660 = vmatpush3.bf16.msra.mxu1 %v659_v52  ;;  %638 = vmatprep.mubr.msk.f32.mxu1 %vm729_vm0, %v730_v13 }
 0x193   :  { %639 = vmatmul.mubr.msk.f32.vlgmr.msra.gmra.mrb[4].mxu1 %vm168_vm1, %v163_v36 }
 0x194   :  { %646 = vmatprep.mubr.msk.f32.mxu1 %vm243_vm2, %v166_v51 }
 0x25e   :  { %v626_v54 = vpop.f32.mrb[0].mxu1 }
 0x25f   :  { %v574_v55 = vmul.f32 -1.442695, %v626_v54  ;;  %v326_v56 = vpop.f32.mrb[1].mxu1 }
 0x260   :  { %v573_v57 = vmul.f32 -1.442695, %v326_v56 }
 0x261   :  { %669 = vpow2.f32 %v574_v55 }
 0x262   :  { %671 = vpow2.f32 %v573_v57  ;;  %v629_v58 = vpop.f32.mrb[2].mxu1 }
 0x263   :  { %v576_v59 = vmul.f32 -1.442695, %v629_v58  ;;  %v336_v60 = vpop.f32.mrb[3].mxu1 }
 0x264   :  { %v575_v61 = vmul.f32 -1.442695, %v336_v60 }
 0x265   :  { %673 = vpow2.f32 %v576_v59 }
 0x266   :  { %675 = vpow2.f32 %v575_v61  ;;  %v440_v62 = vpop.f32.mrb[4].mxu1 }
 0x267   :  { %v444_v63 = vmax.f32 %v440_v62, 0.0  ;;  %v640_v0 = vpop.f32.mrb[5].mxu1 }
 0x269   :  { %641 = vmatprep.subr.msk.mxu0 %vm256_vm3, %v444_v63  ;;  %661 = vmatprep.subr.msk.mxu1 %vm256_vm3, %v444_v63 }
 0x26a   :  { %642 = vmatpush3.msk.msra.mxu0 %vm256_vm3, %v444_v63  ;;  %662 = vmatpush3.msk.msra.mxu1 %vm256_vm3, %v444_v63 }
 0x26b   :  { %v670_v1 = vpop.eup %669  ;;  %644 = vmatmul.mubr.msk.f32.vlgmr.msra.gmra.mrb[2].mxu0 %vm243_vm2, %v165_v49  ;;  %647 = vmatmul.mubr.msk.f32.vlgmr.msra.gmra.mrb[6].mxu1 %vm243_vm2, %v167_v53 }
 0x26c   :  { %v672_v2 = vpop.eup %671  ;;  %v358_v3 = vadd.f32 1.0, %v670_v1 }
 0x26d   :  { %v357_v4 = vadd.f32 1.0, %v672_v2 }
 0x26e   :  { %677 = vrcp.f32 %v358_v3 }
 0x26f   :  { %v674_v5 = vpop.eup %673  ;;  %679 = vrcp.f32 %v357_v4 }
 0x270   :  { %v676_v6 = vpop.eup %675  ;;  %v360_v7 = vadd.f32 1.0, %v674_v5 }
 0x271   :  { %v359_v8 = vadd.f32 1.0, %v676_v6 }
 0x272   :  { %681 = vrcp.f32 %v360_v7 }
 0x273   :  { %683 = vrcp.f32 %v359_v8 }
 0x278   :  { %v678_v9 = vpop.eup %677 }
 0x279   :  { %v680_v10 = vpop.eup %679  ;;  %371 = vst.msk [vmem:[%s837_s3 + $0x8] sm:$0xff] %vm369_vm4, %v678_v9 }
 0x27a   :  { %370 = vst.msk [vmem:[%s837_s3] sm:$0xff] %vm369_vm4, %v680_v10 }
 0x27c   :  { %v682_v11 = vpop.eup %681 }
 0x27d   :  { %v684_v12 = vpop.eup %683  ;;  %373 = vst.msk [vmem:[%s837_s3 + $0x18] sm:$0xff] %vm369_vm4, %v682_v11 }
 0x27e   :  { %372 = vst.msk [vmem:[%s837_s3 + $0x10] sm:$0xff] %vm369_vm4, %v684_v12 }
 0x33e   :  { %v645_v13 = vpop.f32.mrb[2].mxu0  ;;  %v648_v14 = vpop.f32.mrb[6].mxu1 }
 0x33f   :  { %v584_v15 = vmul.f32 -1.442695, %v645_v13  ;;  %v586_v16 = vmul.f32 -1.442695, %v648_v14  ;;  %v514_v17 = vpop.f32.mrb[3].mxu0  ;;  %v524_v18 = vpop.f32.mrb[7].mxu1 }
 0x340   :  { %v583_v19 = vmul.f32 -1.442695, %v514_v17  ;;  %v585_v20 = vmul.f32 -1.442695, %v524_v18 }
 0x341   :  { %685 = vpow2.f32 %v584_v15 }
 0x342   :  { %687 = vpow2.f32 %v586_v16 }
 0x343   :  { %689 = vpow2.f32 %v583_v19 }
 0x344   :  { %691 = vpow2.f32 %v585_v20 }
 0x34b   :  { %v686_v21 = vpop.eup %685 }
 0x34c   :  { %v688_v22 = vpop.eup %687  ;;  %v546_v23 = vadd.f32 1.0, %v686_v21 }
 0x34d   :  { %v690_v24 = vpop.eup %689  ;;  %v548_v25 = vadd.f32 1.0, %v688_v22 }
 0x34e   :  { %v692_v26 = vpop.eup %691  ;;  %693 = vrcp.f32 %v546_v23  ;;  %v545_v27 = vadd.f32 1.0, %v690_v24 }
 0x34f   :  { %695 = vrcp.f32 %v548_v25  ;;  %v547_v28 = vadd.f32 1.0, %v692_v26 }
 0x350   :  { %697 = vrcp.f32 %v545_v27 }
 0x351   :  { %699 = vrcp.f32 %v547_v28 }
 0x358   :  { %v694_v29 = vpop.eup %693 }
 0x359   :  { %v696_v30 = vpop.eup %695  ;;  %588 = vst.msk [vmem:[%s837_s3 + $0x28] sm:$0xff] %vm369_vm4, %v694_v29 }
 0x35a   :  { %v698_v31 = vpop.eup %697  ;;  %590 = vst.msk [vmem:[%s837_s3 + $0x38] sm:$0xff] %vm369_vm4, %v696_v30 }
 0x35b   :  { %v700_v32 = vpop.eup %699  ;;  %587 = vst.msk [vmem:[%s837_s3 + $0x20] sm:$0xff] %vm369_vm4, %v698_v31 }
 0x35c   :  { %589 = vst.msk [vmem:[%s837_s3 + $0x30] sm:$0xff] %vm369_vm4, %v700_v32 }
 0x35d   :  { %566 = vsyncpa [#allocation4], 1 }

</bundles_post_ra>
